<compile_context>
chip_gen: v6e
topology: v6e:2x2x1
jax: 0.10.0
libtpu: 0.0.40
codegen_flags: <defaults>
</compile_context>

<pallas_src>
import jax
import jax.numpy as jnp
import numpy as np
from jax import lax
from jax.experimental import pallas as pl
from jax.experimental.pallas import tpu as pltpu


_LANE = 128


def _round_up(x, m):
    return ((x + m - 1) // m) * m


def _cdiv(a, b):
    return -(-a // b)


def _vmem_budget():
    """(vmem_limit_bytes, streamed-data budget) sized per TPU generation."""
    try:
        cap = int(pltpu.get_tpu_info().vmem_capacity_bytes)
    except Exception:
        cap = 64 * 1024 * 1024                     # be conservative (v7x-sized)
    if cap >= 100 * 1024 * 1024:                   # v5e / v6e: 128 MiB physical
        return 64 * 1024 * 1024, 40 * 1024 * 1024
    return 48 * 1024 * 1024, 20 * 1024 * 1024      # v7x: 64 MiB, leave headroom


def _balanced_tile(HW, per_lane_bytes, data_budget, max_tile, forced=None):
    """Largest 128-aligned tile under the VMEM data budget, then balanced so the
    ragged waste is bounded by <128 lanes per tile (no padding of HW to t)."""
    if forced is not None:
        t_max = max(_LANE, _round_up(int(forced), _LANE))
    else:
        t_max = (data_budget // max(per_lane_bytes, 1)) // _LANE * _LANE
        t_max = max(_LANE, min(max_tile, t_max))
        # TODO(synk): if even a 128-lane tile exceeds the budget (huge N*C),
        # split the channel axis across the grid instead of relying on headroom.
    n_tiles = _cdiv(HW, t_max)
    t = min(t_max, _round_up(_cdiv(HW, n_tiles), _LANE))
    return t, _cdiv(HW, t)


# --------------------------------------------------------------------------
# shared tail math: conv2 (1x1) -> LayerNorm([Cr,1,1]) -> ReLU -> conv3 (1x1)
# --------------------------------------------------------------------------
def _tail_math(ctx, w2t, b2, gamma, beta, w3t, b3):
    y = jnp.dot(ctx, w2t, preferred_element_type=jnp.float32) + b2
    mu = jnp.mean(y, axis=-1, keepdims=True)
    var = jnp.mean((y - mu) ** 2, axis=-1, keepdims=True)     # population var
    y = (y - mu) * lax.rsqrt(var + 1e-5)
    y = jnp.maximum(y * gamma + beta, 0.0)                    # affine + ReLU
    return jnp.dot(y, w3t, preferred_element_type=jnp.float32) + b3


# --------------------------------------------------------------------------
# pass 1: streamed, masked ctx reduction (accumulates into the output block)
# --------------------------------------------------------------------------
def _make_ctx_kernel(HW, tile, tiles_per_split):
    def kernel(x_ref, w1_ref, b1_ref, ctx_ref):
        split = pl.program_id(0)
        k = pl.program_id(1)

        @pl.when(k == 0)
        def _init():
            ctx_ref[...] = jnp.zeros_like(ctx_ref)

        x = x_ref[...].astype(jnp.float32)                         # (N, C, t)

        # conv1 (1x1, C -> 1): logits[n, t] = sum_c w1[c] * x[n, c, t] + b1
        logits = jnp.sum(x * w1_ref[...], axis=1) + b1_ref[0]      # (N, t)

        # softmax over the batch axis (dim=0 in the PyTorch forward) -> per lane
        m = jnp.max(logits, axis=0, keepdims=True)
        e = jnp.exp(logits - m)
        p = e * pl.reciprocal(jnp.sum(e, axis=0, keepdims=True))   # (N, t)

        # mask ragged / phantom lanes (x is NOT padded on the host)
        g = split * tiles_per_split + k
        pos = g * tile + lax.broadcasted_iota(jnp.int32, (1, 1, tile), 2)
        contrib = jnp.where(pos < HW, x * p[:, None, :], 0.0)      # (N, C, t)

        # per-tile cross-lane reduce (XLU) straight to (N, C); accumulate in the
        # output block, which stays VMEM-resident across the "arbitrary" axis.
        ctx_ref[...] += jnp.sum(contrib, axis=-1)[None]
    return kernel


# --------------------------------------------------------------------------
# tiny tail kernel: sum partial ctx, then conv2 -> LN -> ReLU -> conv3 (once)
# --------------------------------------------------------------------------
def _tail_kernel(ctxp_ref, w2t_ref, b2_ref, gamma_ref, beta_ref, w3t_ref,
                 b3_ref, z_ref):
    ctx = jnp.sum(ctxp_ref[...], axis=0)          # sum the per-core partials
    z_ref[...] = _tail_math(ctx, w2t_ref[...], b2_ref[...], gamma_ref[...],
                            beta_ref[...], w3t_ref[...], b3_ref[...])


# --------------------------------------------------------------------------
# pass 2: residual broadcast add (fully parallel, writes in place over x)
# --------------------------------------------------------------------------
def _residual_kernel(x_ref, z_ref, o_ref):
    o_ref[...] = (x_ref[...].astype(jnp.float32) + z_ref[...]).astype(o_ref.dtype)


# --------------------------------------------------------------------------
# fused single-block fast path: one read of x instead of two
# --------------------------------------------------------------------------
def _fused_kernel(x_ref, w1_ref, b1_ref, w2t_ref, b2_ref, gamma_ref, beta_ref,
                  w3t_ref, b3_ref, o_ref):
    x = x_ref[...].astype(jnp.float32)                             # (N, C, HW)
    logits = jnp.sum(x * w1_ref[...], axis=1) + b1_ref[0]
    m = jnp.max(logits, axis=0, keepdims=True)
    e = jnp.exp(logits - m)
    p = e * pl.reciprocal(jnp.sum(e, axis=0, keepdims=True))
    ctx = jnp.sum(x * p[:, None, :], axis=-1)                      # (N, C)
    z = _tail_math(ctx, w2t_ref[...], b2_ref[...], gamma_ref[...],
                   beta_ref[...], w3t_ref[...], b3_ref[...])
    o_ref[...] = (x + z[:, :, None]).astype(o_ref.dtype)


def gcblock_forward(x, params, *, hw_tile=None, num_splits=2):
    """GCBlock forward. x: (N, C, H, W); I/O dtype (f32 / bf16) is preserved."""
    w1, b1, w2, b2, gamma, beta, w3, b3 = params
    N, C, H, W = x.shape
    Cr = w2.shape[0]
    HW = H * W
    out_dtype = x.dtype
    itemsize = jnp.dtype(out_dtype).itemsize
    f32 = jnp.float32

    vmem_limit, data_budget = _vmem_budget()

    x3 = x.reshape(N, C, HW)          # contiguous reshape: no pad, no copy

    # kernel-friendly weight layouts (tiny, converted once per call)
    w1c = w1.reshape(C, 1).astype(f32)     # channels on sublanes
    b1s = b1.reshape(1).astype(f32)        # scalar conv1 bias lives in SMEM
    w2t = w2.T.astype(f32)                 # (C, Cr)
    b2r = b2.reshape(1, Cr).astype(f32)
    gmr = gamma.reshape(1, Cr).astype(f32)
    btr = beta.reshape(1, Cr).astype(f32)
    w3t = w3.T.astype(f32)                 # (Cr, C)
    b3r = b3.reshape(1, C).astype(f32)

    vmem = pl.BlockSpec(memory_space=pltpu.MemorySpace.VMEM)
    smem = pl.BlockSpec(memory_space=pltpu.MemorySpace.SMEM)

    # ---- fused fast path (weights now included in the VMEM check) ----
    weight_bytes = 4 * (2 * C * Cr + 3 * Cr + 2 * C + 1)
    fused_bytes = N * C * HW * (2 * itemsize + 12) + N * HW * 8 + weight_bytes
    if hw_tile is None and fused_bytes <= data_budget:
        out = pl.pallas_call(
            _fused_kernel,
            out_shape=jax.ShapeDtypeStruct((N, C, HW), out_dtype),
            in_specs=[vmem, vmem, smem, vmem, vmem, vmem, vmem, vmem, vmem],
            out_specs=vmem,
            compiler_params=pltpu.CompilerParams(vmem_limit_bytes=vmem_limit),
            cost_estimate=pl.CostEstimate(
                flops=5 * N * C * HW + 4 * N * C * Cr,
                transcendentals=N * HW,
                bytes_accessed=2 * N * C * HW * itemsize),
        )(x3, w1c, b1s, w2t, b2r, gmr, btr, w3t, b3r)
        return out.reshape(N, C, H, W)

    # ---- pass 1: masked ctx reduction, split across a "parallel" axis ----
    per_lane1 = N * C * (2 * itemsize + 8) + N * 8   # dbuf x + f32 temps + logits
    t1, n_tiles = _balanced_tile(HW, per_lane1, data_budget, 2048, hw_tile)
    S = max(1, min(int(num_splits), n_tiles))        # 2 splits -> both v7x cores
    tiles_per_split = _cdiv(n_tiles, S)

    if S * tiles_per_split == n_tiles:
        x_index_map = lambda s, k: (0, 0, s * tiles_per_split + k)
    else:
        def x_index_map(s, k):
            # clamp phantom tiles onto the last real tile; their contribution
            # is masked to zero inside the kernel.
            return (0, 0, jnp.minimum(s * tiles_per_split + k, n_tiles - 1))

    ctx_partial = pl.pallas_call(
        _make_ctx_kernel(HW, t1, tiles_per_split),
        out_shape=jax.ShapeDtypeStruct((S, N, C), f32),
        grid_spec=pltpu.PrefetchScalarGridSpec(
            num_scalar_prefetch=0,
            grid=(S, tiles_per_split),
            in_specs=[
                pl.BlockSpec((N, C, t1), x_index_map),
                pl.BlockSpec((C, 1), lambda s, k: (0, 0)),   # conv1 weight
                smem,                                        # conv1 bias (scalar)
            ],
            out_specs=pl.BlockSpec((1, N, C), lambda s, k: (s, 0, 0)),
        ),
        compiler_params=pltpu.CompilerParams(
            dimension_semantics=("parallel", "arbitrary"),
            vmem_limit_bytes=vmem_limit),
        cost_estimate=pl.CostEstimate(
            flops=5 * N * C * HW,
            transcendentals=N * HW,
            bytes_accessed=N * C * HW * itemsize + S * N * C * 4),
    )(x3, w1c, b1s)

    # ---- tiny tail kernel (runs once; weights never ride the x pipeline) ----
    z = pl.pallas_call(
        _tail_kernel,
        out_shape=jax.ShapeDtypeStruct((N, C), f32),
        in_specs=[vmem] * 7,
        out_specs=vmem,
    )(ctx_partial, w2t, b2r, gmr, btr, w3t, b3r)

    # ---- pass 2: stream x again, broadcast-add z, write in place over x ----
    per_lane2 = N * C * (4 * itemsize + 4)           # dbuf x in + dbuf out + temp
    t2, n2 = _balanced_tile(HW, per_lane2, data_budget, 4096, hw_tile)
    z3 = z.reshape(N, C, 1)                          # lane-broadcastable layout
    out = pl.pallas_call(
        _residual_kernel,
        out_shape=jax.ShapeDtypeStruct((N, C, HW), out_dtype),
        grid_spec=pltpu.PrefetchScalarGridSpec(
            num_scalar_prefetch=0,
            grid=(n2,),
            in_specs=[pl.BlockSpec((N, C, t2), lambda k: (0, 0, k)),
                      pl.BlockSpec((N, C, 1), lambda k: (0, 0, 0))],
            out_specs=pl.BlockSpec((N, C, t2), lambda k: (0, 0, k)),
        ),
        compiler_params=pltpu.CompilerParams(
            dimension_semantics=("parallel",),        # both v7x TCs split tiles
            vmem_limit_bytes=vmem_limit),
        input_output_aliases={0: 0},                  # x is consumed: in-place
        cost_estimate=pl.CostEstimate(
            flops=N * C * HW, transcendentals=0,
            bytes_accessed=2 * N * C * HW * itemsize),
    )(x3, z3)
    return out.reshape(N, C, H, W)


# --------------------------------------------------------------------------
# pure-JAX reference mirroring the PyTorch forward exactly
# --------------------------------------------------------------------------
def gcblock_reference(x, params):
    w1, b1, w2, b2, gamma, beta, w3, b3 = params
    N, C, H, W = x.shape
    HW = H * W
    logits = jnp.einsum('nchw,c->nhw', x, w1).reshape(N, HW) + b1[0]
    p = jax.nn.softmax(logits, axis=0)                        # softmax over batch
    ctx = jnp.einsum('nck,nk->nc', x.reshape(N, C, HW), p)    # (N, C)
    y = ctx @ w2.T + b2
    mu = y.mean(-1, keepdims=True)
    var = ((y - mu) ** 2).mean(-1, keepdims=True)
    y = (y - mu) / jnp.sqrt(var + 1e-5) * gamma + beta
    y = jnp.maximum(y, 0.0)
    z = y @ w3.T + b3
    return x + z[:, :, None, None]


def init_params(key, C, r=1):
    # NOTE: the PyTorch module's LayerNorm([C,1,1]) only type-checks for r=1.
    Cr = int(C / r)
    ks = jax.random.split(key, 8)
    w1 = 0.1 * jax.random.normal(ks[0], (C,), jnp.float32)        # conv1 (1,C,1,1)
    b1 = 0.1 * jax.random.normal(ks[1], (1,), jnp.float32)
    w2 = 0.1 * jax.random.normal(ks[2], (Cr, C), jnp.float32)     # conv2
    b2 = 0.1 * jax.random.normal(ks[3], (Cr,), jnp.float32)
    gamma = 1.0 + 0.1 * jax.random.normal(ks[4], (Cr,), jnp.float32)   # LN weight
    beta = 0.1 * jax.random.normal(ks[5], (Cr,), jnp.float32)          # LN bias
    w3 = 0.1 * jax.random.normal(ks[6], (C, Cr), jnp.float32)     # conv3
    b3 = 0.1 * jax.random.normal(ks[7], (C,), jnp.float32)
    return (w1, b1, w2, b2, gamma, beta, w3, b3)


if __name__ == "__main__":
    key = jax.random.PRNGKey(0)
    kx, kp = jax.random.split(key)

    N, C, H, W = 2, 4, 16, 16
    x = jax.random.normal(kx, (N, C, H, W), jnp.float32)
    params = init_params(kp, C, r=1)
    ref = gcblock_reference(x, params)

    fwd = jax.jit(gcblock_forward, static_argnames=("hw_tile", "num_splits"))

    # forced 128-lane tiles -> multi-step grid, 2-way split, ctx accumulation
    out_tiled = jax.block_until_ready(fwd(x, params, hw_tile=128))
    np.testing.assert_allclose(np.asarray(out_tiled), np.asarray(ref),
                               rtol=1e-4, atol=1e-4)

    # auto path (small problem -> fused single-block fast path)
    out_auto = jax.block_until_ready(fwd(x, params))
    np.testing.assert_allclose(np.asarray(out_auto), np.asarray(ref),
                               rtol=1e-4, atol=1e-4)

    # HW not a multiple of the tile (ragged mask), odd tile count (phantom tile
    # in the 2-way split, clamped index_map), masked last-block writeback in
    # pass 2 — plus the fused auto path for the same shape.
    x_odd = jax.random.normal(kx, (2, 4, 16, 20), jnp.float32)    # HW = 320
    ref_odd = gcblock_reference(x_odd, params)
    out_odd = jax.block_until_ready(fwd(x_odd, params, hw_tile=128))
    np.testing.assert_allclose(np.asarray(out_odd), np.asarray(ref_odd),
                               rtol=1e-4, atol=1e-4)
    out_odd_auto = jax.block_until_ready(fwd(x_odd, params))
    np.testing.assert_allclose(np.asarray(out_odd_auto), np.asarray(ref_odd),
                               rtol=1e-4, atol=1e-4)

    # bf16 I/O path (halves HBM traffic; internals accumulate in f32)
    x_bf16 = x.astype(jnp.bfloat16)
    out_bf16 = jax.block_until_ready(fwd(x_bf16, params, hw_tile=128))
    ref_bf16 = gcblock_reference(x_bf16.astype(jnp.float32), params)
    np.testing.assert_allclose(np.asarray(out_bf16.astype(jnp.float32)),
                               np.asarray(ref_bf16), rtol=5e-2, atol=5e-2)

    print("KERNEL_OK")
</pallas_src>

<mosaic_0001>
module attributes {stable_mosaic.version = 11 : i64} {
  func.func @kernel(%arg0: i32, %arg1: i32, %arg2: memref<2x4x128xf32, #tpu.memory_space<vmem>>, %arg3: memref<4x1xf32, #tpu.memory_space<vmem>>, %arg4: memref<1xf32, #tpu.memory_space<smem>>, %arg5: memref<1x2x4xf32, #tpu.memory_space<vmem>>) attributes {dimension_semantics = [#tpu.dimension_semantics<parallel>, #tpu.dimension_semantics<arbitrary>], iteration_bounds = array<i64: 2, 1>, scalar_prefetch = 0 : i64, scratch_operands = 0 : i64, tpu.core_type = #tpu.core_type<tc>, window_params = [{transform_indices = @transform_0, window_bounds = array<i64: 2, 4, 128>}, {pipeline_mode = #tpu.pipeline_mode<synchronous>, transform_indices = @transform_1, window_bounds = array<i64: 4, 1>}, {transform_indices = @transform_2, window_bounds = array<i64: 1>}, {transform_indices = @transform_3, window_bounds = array<i64: 1, 2, 4>}]} {
    %c0_i32 = arith.constant 0 : i32
    %0 = arith.cmpi eq, %arg1, %c0_i32 : i32
    %1 = arith.extui %0 : i1 to i32
    %c0_i32_0 = arith.constant 0 : i32
    %2 = arith.cmpi ne, %1, %c0_i32_0 : i32
    scf.if %2 {
      %cst_16 = arith.constant 0.000000e+00 : f32
      %42 = vector.broadcast %cst_16 : f32 to vector<1x2x4xf32>
      %c0_17 = arith.constant 0 : index
      %c0_18 = arith.constant 0 : index
      %c0_19 = arith.constant 0 : index
      %43 = vector.load %arg5[%c0_17, %c0_18, %c0_19] : memref<1x2x4xf32, #tpu.memory_space<vmem>>, vector<1x2x4xf32>
      tpu.vector_store %arg5[%c0_17, %c0_18, %c0_19], %42 {strides = array<i32>} : memref<1x2x4xf32, #tpu.memory_space<vmem>>, vector<1x2x4xf32>,
    } else {
    }
    %c0 = arith.constant 0 : index
    %c0_1 = arith.constant 0 : index
    %c0_2 = arith.constant 0 : index
    %3 = vector.load %arg2[%c0, %c0_1, %c0_2] : memref<2x4x128xf32, #tpu.memory_space<vmem>>, vector<2x4x128xf32>
    %c0_3 = arith.constant 0 : index
    %c0_4 = arith.constant 0 : index
    %4 = vector.load %arg3[%c0_3, %c0_4] : memref<4x1xf32, #tpu.memory_space<vmem>>, vector<4x1xf32>
    %5 = vector.shape_cast %4 : vector<4x1xf32> to vector<1x4x1xf32>
    %6 = vector.broadcast %5 : vector<1x4x1xf32> to vector<2x4x128xf32>
    %7 = arith.mulf %3, %6 : vector<2x4x128xf32>
    %cst = arith.constant dense<0.000000e+00> : vector<2x128xf32>
    %8 = vector.multi_reduction <add>, %7, %cst [1] : vector<2x4x128xf32> to vector<2x128xf32>
    %c0_5 = arith.constant 0 : index
    %9 = memref.load %arg4[%c0_5] : memref<1xf32, #tpu.memory_space<smem>>
    %10 = vector.broadcast %9 : f32 to vector<2x128xf32>
    %11 = arith.addf %8, %10 : vector<2x128xf32>
    %cst_6 = arith.constant dense<0xFF800000> : vector<128xf32>
    %12 = vector.multi_reduction <maximumf>, %11, %cst_6 [0] : vector<2x128xf32> to vector<128xf32>
    %13 = vector.shape_cast %12 : vector<128xf32> to vector<1x128xf32>
    %14 = vector.broadcast %13 : vector<1x128xf32> to vector<2x128xf32>
    %15 = arith.subf %11, %14 : vector<2x128xf32>
    %16 = math.exp %15 : vector<2x128xf32>
    %cst_7 = arith.constant dense<0.000000e+00> : vector<128xf32>
    %17 = vector.multi_reduction <add>, %16, %cst_7 [0] : vector<2x128xf32> to vector<128xf32>
    %18 = vector.shape_cast %17 : vector<128xf32> to vector<1x128xf32>
    %19 = tpu.reciprocal %18 : vector<1x128xf32> -> vector<1x128xf32>
    %20 = vector.broadcast %19 : vector<1x128xf32> to vector<2x128xf32>
    %21 = arith.mulf %16, %20 : vector<2x128xf32>
    %c1_i32 = arith.constant 1 : i32
    %22 = arith.muli %arg0, %c1_i32 : i32
    %23 = arith.addi %22, %arg1 : i32
    %c128_i32 = arith.constant 128 : i32
    %24 = arith.muli %23, %c128_i32 : i32
    %25 = tpu.iota {dimensions = array<i32: 2>} : vector<1x1x128xi32>
    %26 = vector.broadcast %24 : i32 to vector<1x1x128xi32>
    %27 = arith.addi %26, %25 : vector<1x1x128xi32>
    %c256_i32 = arith.constant 256 : i32
    %28 = vector.broadcast %c256_i32 : i32 to vector<1x1x128xi32>
    %29 = arith.cmpi slt, %27, %28 : vector<1x1x128xi32>
    %30 = vector.shape_cast %21 : vector<2x128xf32> to vector<2x1x128xf32>
    %31 = vector.broadcast %30 : vector<2x1x128xf32> to vector<2x4x128xf32>
    %32 = arith.mulf %3, %31 : vector<2x4x128xf32>
    %cst_8 = arith.constant 0.000000e+00 : f32
    %33 = vector.shape_cast %29 : vector<1x1x128xi1> to vector<1x1x128xi1>
    %34 = vector.broadcast %33 : vector<1x1x128xi1> to vector<2x4x128xi1>
    %35 = vector.broadcast %cst_8 : f32 to vector<2x4x128xf32>
    %36 = arith.select %34, %32, %35 : vector<2x4x128xi1>, vector<2x4x128xf32>
    %c0_9 = arith.constant 0 : index
    %c0_10 = arith.constant 0 : index
    %c0_11 = arith.constant 0 : index
    %37 = vector.load %arg5[%c0_9, %c0_10, %c0_11] : memref<1x2x4xf32, #tpu.memory_space<vmem>>, vector<1x2x4xf32>
    %cst_12 = arith.constant dense<0.000000e+00> : vector<2x4xf32>
    %38 = vector.multi_reduction <add>, %36, %cst_12 [2] : vector<2x4x128xf32> to vector<2x4xf32>
    %39 = vector.shape_cast %38 : vector<2x4xf32> to vector<1x2x4xf32>
    %40 = arith.addf %37, %39 : vector<1x2x4xf32>
    %c0_13 = arith.constant 0 : index
    %c0_14 = arith.constant 0 : index
    %c0_15 = arith.constant 0 : index
    %41 = vector.load %arg5[%c0_13, %c0_14, %c0_15] : memref<1x2x4xf32, #tpu.memory_space<vmem>>, vector<1x2x4xf32>
    tpu.vector_store %arg5[%c0_13, %c0_14, %c0_15], %40 {strides = array<i32>} : memref<1x2x4xf32, #tpu.memory_space<vmem>>, vector<1x2x4xf32>,
    return
  }
  func.func @transform_0(%arg0: i32, %arg1: i32) -> (i32, i32, i32) {
    %c1_i32 = arith.constant 1 : i32
    %0 = arith.muli %arg0, %c1_i32 : i32
    %1 = arith.addi %0, %arg1 : i32
    %c0_i32 = arith.constant 0 : i32
    %c0_i32_0 = arith.constant 0 : i32
    %c0_i32_1 = arith.constant 0 : i32
    return %c0_i32, %c0_i32_0, %1 : i32, i32, i32
  }
  func.func @transform_1(%arg0: i32, %arg1: i32) -> (i32, i32) {
    %c0_i32 = arith.constant 0 : i32
    %c0_i32_0 = arith.constant 0 : i32
    %c0_i32_1 = arith.constant 0 : i32
    return %c0_i32, %c0_i32_0 : i32, i32
  }
  func.func @transform_2(%arg0: i32, %arg1: i32) -> i32 {
    %c0_i32 = arith.constant 0 : i32
    %c0_i32_0 = arith.constant 0 : i32
    return %c0_i32 : i32
  }
  func.func @transform_3(%arg0: i32, %arg1: i32) -> (i32, i32, i32) {
    %c0_i32 = arith.constant 0 : i32
    %c0_i32_0 = arith.constant 0 : i32
    %c0_i32_1 = arith.constant 0 : i32
    return %arg0, %c0_i32, %c0_i32_0 : i32, i32, i32
  }
}

module attributes {stable_mosaic.version = 11 : i64} {
  func.func @_residual_kernel(%arg0: i32, %arg1: memref<2x4x128xf32, #tpu.memory_space<vmem>>, %arg2: memref<2x4x1xf32, #tpu.memory_space<vmem>>, %arg3: memref<2x4x128xf32, #tpu.memory_space<vmem>>) attributes {dimension_semantics = [#tpu.dimension_semantics<parallel>], iteration_bounds = array<i64: 2>, scalar_prefetch = 0 : i64, scratch_operands = 0 : i64, tpu.core_type = #tpu.core_type<tc>, window_params = [{transform_indices = @transform_0, window_bounds = array<i64: 2, 4, 128>}, {pipeline_mode = #tpu.pipeline_mode<synchronous>, transform_indices = @transform_1, window_bounds = array<i64: 2, 4, 1>}, {transform_indices = @transform_2, window_bounds = array<i64: 2, 4, 128>}]} {
    %c0 = arith.constant 0 : index
    %c0_0 = arith.constant 0 : index
    %c0_1 = arith.constant 0 : index
    %0 = vector.load %arg1[%c0, %c0_0, %c0_1] : memref<2x4x128xf32, #tpu.memory_space<vmem>>, vector<2x4x128xf32>
    %c0_2 = arith.constant 0 : index
    %c0_3 = arith.constant 0 : index
    %c0_4 = arith.constant 0 : index
    %1 = vector.load %arg2[%c0_2, %c0_3, %c0_4] : memref<2x4x1xf32, #tpu.memory_space<vmem>>, vector<2x4x1xf32>
    %2 = vector.broadcast %1 : vector<2x4x1xf32> to vector<2x4x128xf32>
    %3 = arith.addf %0, %2 : vector<2x4x128xf32>
    %c0_5 = arith.constant 0 : index
    %c0_6 = arith.constant 0 : index
    %c0_7 = arith.constant 0 : index
    %4 = vector.load %arg3[%c0_5, %c0_6, %c0_7] : memref<2x4x128xf32, #tpu.memory_space<vmem>>, vector<2x4x128xf32>
    tpu.vector_store %arg3[%c0_5, %c0_6, %c0_7], %3 {strides = array<i32>} : memref<2x4x128xf32, #tpu.memory_space<vmem>>, vector<2x4x128xf32>,
    return
  }
  func.func @transform_0(%arg0: i32) -> (i32, i32, i32) {
    %c0_i32 = arith.constant 0 : i32
    %c0_i32_0 = arith.constant 0 : i32
    %c0_i32_1 = arith.constant 0 : i32
    return %c0_i32, %c0_i32_0, %arg0 : i32, i32, i32
  }
  func.func @transform_1(%arg0: i32) -> (i32, i32, i32) {
    %c0_i32 = arith.constant 0 : i32
    %c0_i32_0 = arith.constant 0 : i32
    %c0_i32_1 = arith.constant 0 : i32
    %c0_i32_2 = arith.constant 0 : i32
    return %c0_i32, %c0_i32_0, %c0_i32_1 : i32, i32, i32
  }
  func.func @transform_2(%arg0: i32) -> (i32, i32, i32) {
    %c0_i32 = arith.constant 0 : i32
    %c0_i32_0 = arith.constant 0 : i32
    %c0_i32_1 = arith.constant 0 : i32
    return %c0_i32, %c0_i32_0, %arg0 : i32, i32, i32
  }
}

module attributes {stable_mosaic.version = 11 : i64} {
  func.func @_tail_kernel(%arg0: memref<2x2x4xf32, #tpu.memory_space<vmem>>, %arg1: memref<4x4xf32, #tpu.memory_space<vmem>>, %arg2: memref<1x4xf32, #tpu.memory_space<vmem>>, %arg3: memref<1x4xf32, #tpu.memory_space<vmem>>, %arg4: memref<1x4xf32, #tpu.memory_space<vmem>>, %arg5: memref<4x4xf32, #tpu.memory_space<vmem>>, %arg6: memref<1x4xf32, #tpu.memory_space<vmem>>, %arg7: memref<2x4xf32, #tpu.memory_space<vmem>>) attributes {dimension_semantics = [], scalar_prefetch = 0 : i64, scratch_operands = 0 : i64, tpu.core_type = #tpu.core_type<tc>} {
    %c0 = arith.constant 0 : index
    %c0_0 = arith.constant 0 : index
    %c0_1 = arith.constant 0 : index
    %0 = vector.load %arg0[%c0, %c0_0, %c0_1] : memref<2x2x4xf32, #tpu.memory_space<vmem>>, vector<2x2x4xf32>
    %cst = arith.constant dense<0.000000e+00> : vector<2x4xf32>
    %1 = vector.multi_reduction <add>, %0, %cst [0] : vector<2x2x4xf32> to vector<2x4xf32>
    %c0_2 = arith.constant 0 : index
    %c0_3 = arith.constant 0 : index
    %2 = vector.load %arg1[%c0_2, %c0_3] : memref<4x4xf32, #tpu.memory_space<vmem>>, vector<4x4xf32>
    %c0_4 = arith.constant 0 : index
    %c0_5 = arith.constant 0 : index
    %3 = vector.load %arg2[%c0_4, %c0_5] : memref<1x4xf32, #tpu.memory_space<vmem>>, vector<1x4xf32>
    %c0_6 = arith.constant 0 : index
    %c0_7 = arith.constant 0 : index
    %4 = vector.load %arg3[%c0_6, %c0_7] : memref<1x4xf32, #tpu.memory_space<vmem>>, vector<1x4xf32>
    %c0_8 = arith.constant 0 : index
    %c0_9 = arith.constant 0 : index
    %5 = vector.load %arg4[%c0_8, %c0_9] : memref<1x4xf32, #tpu.memory_space<vmem>>, vector<1x4xf32>
    %c0_10 = arith.constant 0 : index
    %c0_11 = arith.constant 0 : index
    %6 = vector.load %arg5[%c0_10, %c0_11] : memref<4x4xf32, #tpu.memory_space<vmem>>, vector<4x4xf32>
    %c0_12 = arith.constant 0 : index
    %c0_13 = arith.constant 0 : index
    %7 = vector.load %arg6[%c0_12, %c0_13] : memref<1x4xf32, #tpu.memory_space<vmem>>, vector<1x4xf32>
    %cst_14 = arith.constant dense<0.000000e+00> : vector<2x4xf32>
    %8 = tpu.matmul %1, %2, %cst_14 {dimension_numbers = #tpu.dot_dimension_numbers<[1], [0], [0], [1], [0, 0, 1, 1], [], []>} : vector<2x4xf32>, vector<4x4xf32>, vector<2x4xf32> -> vector<2x4xf32>
    %9 = vector.broadcast %3 : vector<1x4xf32> to vector<2x4xf32>
    %10 = arith.addf %8, %9 : vector<2x4xf32>
    %cst_15 = arith.constant dense<0.000000e+00> : vector<2xf32>
    %11 = vector.multi_reduction <add>, %10, %cst_15 [1] : vector<2x4xf32> to vector<2xf32>
    %12 = vector.shape_cast %11 : vector<2xf32> to vector<2x1xf32>
    %cst_16 = arith.constant 4.000000e+00 : f32
    %13 = vector.broadcast %cst_16 : f32 to vector<2x1xf32>
    %14 = arith.divf %12, %13 : vector<2x1xf32>
    %15 = vector.broadcast %14 : vector<2x1xf32> to vector<2x4xf32>
    %16 = arith.subf %10, %15 : vector<2x4xf32>
    %17 = arith.mulf %16, %16 : vector<2x4xf32>
    %cst_17 = arith.constant dense<0.000000e+00> : vector<2xf32>
    %18 = vector.multi_reduction <add>, %17, %cst_17 [1] : vector<2x4xf32> to vector<2xf32>
    %19 = vector.shape_cast %18 : vector<2xf32> to vector<2x1xf32>
    %cst_18 = arith.constant 4.000000e+00 : f32
    %20 = vector.broadcast %cst_18 : f32 to vector<2x1xf32>
    %21 = arith.divf %19, %20 : vector<2x1xf32>
    %22 = vector.broadcast %14 : vector<2x1xf32> to vector<2x4xf32>
    %23 = arith.subf %10, %22 : vector<2x4xf32>
    %cst_19 = arith.constant 9.99999974E-6 : f32
    %24 = vector.broadcast %cst_19 : f32 to vector<2x1xf32>
    %25 = arith.addf %21, %24 : vector<2x1xf32>
    %26 = math.rsqrt %25 : vector<2x1xf32>
    %27 = vector.broadcast %26 : vector<2x1xf32> to vector<2x4xf32>
    %28 = arith.mulf %23, %27 : vector<2x4xf32>
    %29 = vector.broadcast %4 : vector<1x4xf32> to vector<2x4xf32>
    %30 = arith.mulf %28, %29 : vector<2x4xf32>
    %31 = vector.broadcast %5 : vector<1x4xf32> to vector<2x4xf32>
    %32 = arith.addf %30, %31 : vector<2x4xf32>
    %cst_20 = arith.constant 0.000000e+00 : f32
    %33 = vector.broadcast %cst_20 : f32 to vector<2x4xf32>
    %34 = arith.maximumf %32, %33 : vector<2x4xf32>
    %cst_21 = arith.constant dense<0.000000e+00> : vector<2x4xf32>
    %35 = tpu.matmul %34, %6, %cst_21 {dimension_numbers = #tpu.dot_dimension_numbers<[1], [0], [0], [1], [0, 0, 1, 1], [], []>} : vector<2x4xf32>, vector<4x4xf32>, vector<2x4xf32> -> vector<2x4xf32>
    %36 = vector.broadcast %7 : vector<1x4xf32> to vector<2x4xf32>
    %37 = arith.addf %35, %36 : vector<2x4xf32>
    %c0_22 = arith.constant 0 : index
    %c0_23 = arith.constant 0 : index
    %38 = vector.load %arg7[%c0_22, %c0_23] : memref<2x4xf32, #tpu.memory_space<vmem>>, vector<2x4xf32>
    tpu.vector_store %arg7[%c0_22, %c0_23], %37 {strides = array<i32>} : memref<2x4xf32, #tpu.memory_space<vmem>>, vector<2x4xf32>,
    return
  }
}

</mosaic_0001>

<bundles_post_ra>
// kernel: gcblock_forward.3
= control target key start
LH: loop header
LB: loop body
LE: loop exit
PB: predicated region body
PF: predicated region fallthrough
CT: control target
= control target key end

     0   :  { %s613_s0 = inlined_call_operand.vmem [shape: f32[2,4,256], index: 0, kind: input, shape index: {}]   ;;  %s614_s1 = inlined_call_operand.vmem [shape: f32[4,1], index: 1, kind: input, shape index: {}]   ;;  %s615_s2 = inlined_call_operand.<no memory space> [shape: f32[1], index: 2, kind: input, shape index: {}]   ;;  %s616_s3 = inlined_call_operand.vmem [shape: f32[2,2,4], index: 3, kind: output, shape index: {}]  }
   0x1   :  { %8 = sst [smem:[#allocation2]] %s615_s2 }
   0x2   :  { %s533_s14 = smov 0   ;;  %s535_s15 = smov 0  }
   0x3   :  { %s537_s16 = smov 0   ;;  %s539_s17 = smov 0  }
   0x4   :  { %s541_s18 = smov 0  }
   0x5 LB: > { %s26_s2 = sadd.s32 1, %s502_s17  ;;  %p42_p1 = scmp.ne.s32.totalorder %s494_s15, %s490_s14  ;;  %s506_s18 = sphi %s541_s18, %s14_s18   ;;  %s502_s17 = sphi %s539_s17, %s620_s17   ;;  %s498_s16 = sphi %s537_s16, %s619_s16   ;;  %s494_s15 = sphi %s535_s15, %s618_s15   ;;  %s490_s14 = sphi %s533_s14, %s617_s14  }
   0x6   : > { %p28_p0 = scmp.ge.s32.totalorder %s26_s2, 2  ;;  %p43_p2 = scmp.eq.s32.totalorder %s506_s18, 0 }
   0x7   : > { %s35_s20 = sadd.s32 1, %s494_s15  ;;  %p410_p5 = scmp.ge.s32.totalorder %s506_s18, 2 }
   0x8   : > { %s622_s2 = smov (%p28_p0, %s26_s2), 0  ;;  %p44_p3 = por %p43_p2, %p42_p1 }
   0x9   : > { %s32_s19 = ssub.s32 %s502_s17, %s622_s2  ;;  %142 = sbr.rel (%p410_p5) target bundleno = 19 (0x13), region = 24 }
   0xa   : > { %p33_p4 = scmp.eq.s32.totalorder %s32_s19, 0 }
   0xc   : > { %s568_s21 = scalar_select %p33_p4, %s494_s15, %s35_s20  }
   0xe   : > { %145 = sbr.rel (!%p44_p3) target bundleno = 19 (0x13), region = 28  ;;  %s147_s22 = sand.u32 (%p44_p3), 1, %s494_s15  }
   0xf   : > { %s412_s23 = sshll.u32 (%p44_p3), %s502_s17, 2  ;;  %s411_s24 = sshll.u32 (%p44_p3), %s147_s22, 3 }
  0x10   : > { %s152_s27 = scalar_lea.vmem (%p44_p3), %s613_s0, %s412_s23  ;;  %s149_s28 = scalar_lea.vmem (%p44_p3), [#allocation3], %s411_s24 }
  0x11   : > { %v169_v0 = vld [vmem:[%s152_s27] sm:$0xf] (%p44_p3)  ;;  %v171_v1 = vld [vmem:[%s152_s27 + $0x8] sm:$0xf] (%p44_p3) }
  0x12   : > { %170 = vst [vmem:[%s149_s28] sm:$0xf] (%p44_p3), %v169_v0  ;;  %172 = vst [vmem:[%s149_s28 + $0x4] sm:$0xf] (%p44_p3), %v171_v1 }
  0x13 PF: > { %p413_p6 = scmp.ge.s32.totalorder %s506_s18, 1  ;;  %p199_p7 = scmp.lt.s32.totalorder %s506_s18, 3 }
  0x15   : > { %p200_p8 = pnand %p413_p6, %p199_p7 }
  0x16   : > { %s206_s4 = sand.u32 (!%p200_p8), 1, %s490_s14   ;;  %s264_s7 = sld [smem:[#allocation2]] (!%p200_p8) }
  0x17   : > { %203 = sbr.rel (%p200_p8) target bundleno = 375 (0x177), region = 69  ;;  %s414_s5 = sshll.u32 (!%p200_p8), %s206_s4, 3 }
  0x18   : > { %s208_s6 = scalar_lea.vmem (!%p200_p8), [#allocation3], %s414_s5  ;;  %s416_s8 = sshll.u32 (!%p200_p8), %s498_s16, 7 }
  0x19   : > { %p229_p9 = scmp.lt.s32.totalorder (!%p200_p8), %s498_s16, 1 }
  0x1c   : > { %v241_v2 = vld [vmem:[%s614_s1] sm:$0xf]  ;;  %v508_v3 = vmov 0   ;;  %v290_v4 = vlaneseq  ;;  %v240_v9 = vld [vmem:[%s208_s6 + $0x4] sm:$0xf]  ;;  %vm249_vm0 = vcmask 1043456   ;;  %v265_v25 = vstv %s264_s7 }
  0x1d   : > { %461 = vset.pattern.permute.xlu0 %v508_v3  ;;  %v239_v8 = vld [vmem:[%s208_s6] sm:$0xf]  ;;  %vm278_vm1 = vcmask 1041409   ;;  %vm281_vm2 = vcmask 1041408   ;;  %v300_v47 = vstv %s416_s8  ;;  %s624_s16 = smov (!%p229_p9, %s498_s16), 1  ;;  %vm237_vm4 = vcmask 25600  }
  0x1e   : > { %244 = vperm.xlu0 %461, %v241_v2   ;;  %v291_v5 = vshrl.u32 %v290_v4, 7  ;;  %v299_v6 = vand.u32 127, %v290_v4  ;;  %s415_s9 = sshll.u32 %s624_s16, 1  ;;  %v509_v61 = vmov 0.0  }
  0x1f   : > { %s232_s12 = scalar_lea.vmem %s616_s3, %s415_s9 }
  0x20   : > { %v581_v7 = vsub.s32 %v299_v6, %v291_v5  ;;  %v292_v46 = vsub.s32 0, %v291_v5  ;;  %v301_v50 = vadd.s32 %v300_v47, %v299_v6  ;;  %238 = vst.msk [vmem:[%s232_s12] sm:$0x3] %vm237_vm4, %v509_v61 }
  0x22   : > { %vm302_vm3 = vcmp.lt.s32.totalorder %v301_v50, 256 }
  0x27   : > { %v317_v1 = vld [vmem:[%s232_s12] sm:$0x3] }
  0x99   : > { %v245_v10 = vpop.permute.xlu0 %244 }
  0x9a   : > { %v247_v11 = vmul.f32 %v245_v10, %v239_v8  ;;  %v248_v12 = vmul.f32 %v245_v10, %v240_v9 }
  0x9c   : > { %v250_v13 = vsel %vm249_vm0, %v247_v11, 0.0  ;;  %v257_v14 = vsel %vm249_vm0, %v248_v12, 0.0 }
  0x9d   : > { %v251_v15 = vrot.slane %v250_v13, 4  ;;  %v258_v16 = vrot.slane %v257_v14, 4 }
  0x9f   : > { %v252_v17 = vadd.f32 %v251_v15, %v250_v13  ;;  %v259_v18 = vadd.f32 %v258_v16, %v257_v14 }
  0xa1   : > { %v253_v19 = vrot.slane %v252_v17, 2  ;;  %v260_v20 = vrot.slane %v259_v18, 2 }
  0xa3   : > { %v254_v21 = vadd.f32 %v253_v19, %v252_v17  ;;  %v261_v22 = vadd.f32 %v260_v20, %v259_v18 }
  0xa5   : > { %v255_v23 = vrot.slane %v254_v21, 1  ;;  %v262_v24 = vrot.slane %v261_v22, 1 }
  0xa7   : > { %v256_v26 = vadd.f32 %v255_v23, %v254_v21  ;;  %v263_v27 = vadd.f32 %v262_v24, %v261_v22 }
  0xa9   : > { %v266_v28 = vadd.f32 %v265_v25, %v256_v26  ;;  %v267_v29 = vadd.f32 %v265_v25, %v263_v27 }
  0xab   : > { %v268_v30 = vmax.f32 %v266_v28, %v267_v29 }
  0xad   : > { %v269_v31 = vsub.f32 %v266_v28, %v268_v30  ;;  %v270_v32 = vsub.f32 %v267_v29, %v268_v30 }
  0xaf   : > { %v273_v33 = vmul.f32 1.442695, %v270_v32  ;;  %v271_v34 = vmul.f32 1.442695, %v269_v31 }
  0xb1   : > { %462 = vpow2.f32 %v273_v33 }
  0xb2   : > { %464 = vpow2.f32 %v271_v34 }
  0xbe   : > { %v463_v35 = vpop.eup %462 }
  0xbf   : > { %v277_v36 = vrot.slane %v463_v35, 7  ;;  %v465_v37 = vpop.eup %464 }
  0xc1   : > { %v279_v38 = vsel %vm278_vm1, %v277_v36, %v465_v37 }
  0xc2   : > { %v282_v39 = vsel %vm281_vm2, %v279_v38, 0.0 }
  0xc3   : > { %v283_v40 = vrot.slane %v282_v39, 4 }
  0xc5   : > { %v284_v41 = vadd.f32 %v283_v40, %v282_v39 }
  0xc7   : > { %v285_v42 = vrot.slane %v284_v41, 2 }
  0xc9   : > { %v286_v43 = vadd.f32 %v285_v42, %v284_v41 }
  0xcb   : > { %v287_v44 = vrot.slane %v286_v43, 1 }
  0xcd   : > { %v288_v45 = vadd.f32 %v287_v44, %v286_v43 }
  0xcf   : > { %466 = vrcp.f32 %v288_v45 }
  0xdc   : > { %v467_v48 = vpop.eup %466 }
  0xdd   : > { %v293_v49 = vrot.slane %v467_v48, %v292_v46 }
  0xdf   : > { %v295_v51 = vmul.f32 %v463_v35, %v293_v49  ;;  %v294_v52 = vmul.f32 %v465_v37, %v293_v49 }
  0xe1   : > { %v310_v53 = vrot.slane %v295_v51, %v292_v46  ;;  %v306_v54 = vrot.slane %v294_v52, %v292_v46 }
  0xe3   : > { %v312_v55 = vmul.f32 %v310_v53, %v240_v9  ;;  %v311_v56 = vmul.f32 %v306_v54, %v239_v8 }
  0xe5   : > { %v316_v57 = vsel %vm302_vm3, %v312_v55, 0.0  ;;  %v315_v58 = vsel %vm302_vm3, %v311_v56, 0.0 }
  0xe6   : > { %v321_v59 = vsel %vm249_vm0, %v316_v57, 0.0  ;;  %v318_v60 = vsel %vm249_vm0, %v315_v58, 0.0 }
  0xe7   : > { %322 = vadd.xlane.f32.xlu1 %v321_v59  ;;  %319 = vadd.xlane.f32.xlu0 %v318_v60 }
 0x170   : > { %v323_v62 = vpop.xlane.xlu1 %322  ;;  %v320_v63 = vpop.xlane.xlu0 %319 }
 0x171   : > { %v333_v0 = vrot.slane %v323_v62, %v581_v7  ;;  %v329_v2 = vrot.slane %v320_v63, %v581_v7 }
 0x173   : > { %v334_v3 = vsel %vm278_vm1, %v333_v0, %v329_v2 }
 0x174   : > { %v336_v4 = vadd.f32 %v334_v3, %v317_v1 }
 0x176   : > { %338 = vst.msk [vmem:[%s232_s12] sm:$0x3] %vm237_vm4, %v336_v4 }
 0x177 PF: > { %s14_s18 = sadd.s32 1, %s506_s18   ;;  %s617_s14 = smov %s494_s15 }
 0x178   : > { %p11_p10 = scmp.ge.s32.totalorder %s14_s18, 4   ;;  %s618_s15 = smov %s568_s21 }
 0x179   : > { %s619_s16 = smov %s502_s17  ;;  %s620_s17 = smov %s622_s2 }
 0x17a   :  { %13 = sbr.rel (!%p11_p10) target bundleno = 5 (0x5), region = 112 }

// kernel: gcblock_forward.5
= control target key start
LH: loop header
LB: loop body
LE: loop exit
PB: predicated region body
PF: predicated region fallthrough
CT: control target
= control target key end

     0   :  { %s392_s9 = smov 0   ;;  %s394_s10 = smov 0   ;;  %s458_s0 = inlined_call_operand.vmem [shape: f32[2,4,256], index: 0, kind: input, shape index: {}, may-alias: {0,2}]   ;;  %s459_s1 = inlined_call_operand.vmem [shape: f32[2,4,1], index: 1, kind: input, shape index: {}]   ;;  %s460_s2 = inlined_call_operand.vmem [shape: f32[2,4,256], index: 2, kind: output, shape index: {}, may-alias: {0,2}]  }
   0x1   :  { %s396_s11 = smov 0  }
   0x2 LB: > { %s313_s12 = sadd.s32 4294967295, %s374_s11   ;;  %s409_s13 = sadd.s32 1, %s374_s11   ;;  %s374_s11 = sphi %s396_s11, %s464_s11   ;;  %s370_s10 = sphi %s394_s10, %s463_s10   ;;  %s366_s9 = sphi %s392_s9, %s462_s9  }
   0x3   : > { %s16_s14 = ssub.s32 %s374_s11, %s409_s13  ;;  %s19_s15 = sadd.s32 1, %s370_s10 }
   0x4   : > { %p17_p0 = scmp.eq.s32.totalorder %s16_s14, 0  ;;  %p26_p1 = scmp.ne.s32.totalorder %s370_s10, %s366_s9 }
   0x5   : > { %p27_p2 = scmp.eq.s32.totalorder %s374_s11, 0  ;;  %p77_p3 = scmp.eq.s32.totalorder %s313_s12, 1 }
   0x6   : > { %s420_s16 = scalar_select %p17_p0, %s370_s10, %s19_s15  }
   0x7   : > { %p28_p4 = por %p27_p2, %p26_p1  ;;  %p422_p5 = por %p77_p3, %p26_p1 }
   0x8   : > { %p316_p6 = scmp.ge.s32.totalorder %s374_s11, 2 }
   0xa   : > { %102 = sbr.rel (%p316_p6) target bundleno = 20 (0x14), region = 20 }
   0xf   : > { %105 = sbr.rel (!%p28_p4) target bundleno = 20 (0x14), region = 24  ;;  %s107_s18 = sand.u32 (%p28_p4), 1, %s370_s10  }
  0x10   : > { %s318_s19 = sshll.u32 (%p28_p4), %s374_s11, 2  ;;  %s317_s20 = sshll.u32 (%p28_p4), %s107_s18, 3 }
  0x11   : > { %s111_s23 = scalar_lea.vmem (%p28_p4), %s458_s0, %s318_s19  ;;  %s109_s24 = scalar_lea.vmem (%p28_p4), [#allocation2], %s317_s20 }
  0x12   : > { %v128_v0 = vld [vmem:[%s111_s23] sm:$0xf] (%p28_p4)  ;;  %v130_v1 = vld [vmem:[%s111_s23 + $0x8] sm:$0xf] (%p28_p4) }
  0x13   : > { %129 = vst [vmem:[%s109_s24] sm:$0xf] (%p28_p4), %v128_v0  ;;  %131 = vst [vmem:[%s109_s24 + $0x4] sm:$0xf] (%p28_p4), %v130_v1 }
  0x14 PF: > { %p319_p7 = scmp.ge.s32.totalorder %s374_s11, 1  ;;  %p158_p8 = scmp.lt.s32.totalorder %s374_s11, 3 }
  0x16   : > { %p159_p9 = pnand %p319_p7, %p158_p8 }
  0x17   : > { %s165_s29 = sand.u32 (!%p159_p9), 1, %s366_s9  }
  0x18   : > { %162 = sbr.rel (%p159_p9) target bundleno = 170 (0xaa), region = 65  ;;  %s320_s30 = sshll.u32 (!%p159_p9), %s165_s29, 3 }
  0x19   : > { %s167_s3 = scalar_lea.vmem (!%p159_p9), [#allocation2], %s320_s30  ;;  %s184_s4 = scalar_lea.vmem (!%p159_p9), [#allocation3], %s320_s30 }
  0x1d   : > { %v187_v2 = vld [vmem:[%s459_s1] sm:$0xf]  ;;  %v376_v3 = vmov 0   ;;  %v188_v4 = vld [vmem:[%s459_s1 + $0x4] sm:$0xf]  ;;  %s323_s5 = sshll.u32 (%p422_p5), %s313_s12, 2 }
  0x1e   : > { %351 = vset.pattern.permute.xlu0 %v376_v3  ;;  %v185_v5 = vld [vmem:[%s167_s3] sm:$0xf]  ;;  %v186_v8 = vld [vmem:[%s167_s3 + $0x4] sm:$0xf]  ;;  %s211_s8 = scalar_lea.vmem (%p422_p5), %s460_s2, %s323_s5 }
  0x1f   : > { %191 = vperm.xlu0 %351, %v187_v2  }
  0x23   : > { %196 = vperm.xlu0 %351, %v188_v4  }
  0x9a   : > { %v192_v6 = vpop.permute.xlu0 %191 }
  0x9b   : > { %v199_v7 = vadd.f32 %v192_v6, %v185_v5 }
  0x9d   : > { %201 = vst [vmem:[%s184_s4] sm:$0xf] %v199_v7  ;;  %209 = sbr.rel (!%p422_p5) target bundleno = 170 (0xaa), region = 73 }
  0x9e   : > { %v197_v9 = vpop.permute.xlu0 %196 }
  0x9f   : > { %v200_v10 = vadd.f32 %v197_v9, %v186_v8 }
  0xa1   : > { %202 = vst [vmem:[%s184_s4 + $0x4] sm:$0xf] %v200_v10 }
  0xa4   : > { %v228_v11 = vld [vmem:[%s184_s4] sm:$0xf] }
  0xa5   : > { %229 = vst [vmem:[%s211_s8] sm:$0xf] %v228_v11 }
  0xa8   : > { %v230_v12 = vld [vmem:[%s184_s4 + $0x4] sm:$0xf] }
  0xa9   : > { %231 = vst [vmem:[%s211_s8 + $0x8] sm:$0xf] %v230_v12 }
  0xaa PF: > { %p9_p10 = scmp.ge.s32.totalorder %s409_s13, 4   ;;  %s462_s9 = smov %s370_s10 }
  0xab   : > { %s463_s10 = smov %s420_s16  ;;  %s464_s11 = smov %s409_s13 }
  0xac   :  { %11 = sbr.rel (!%p9_p10) target bundleno = 2 (0x2), region = 145 }

// kernel: gcblock_forward.4
= control target key start
LH: loop header
LB: loop body
LE: loop exit
PB: predicated region body
PF: predicated region fallthrough
CT: control target
= control target key end

     0   :  { %vm48_vm0 = vcmask 1043456   ;;  %vm28_vm1 = vcmask 25600   ;;  %v264_v0 = vmov 0.0   ;;  %vm265_vm2 = vmmov 0   ;;  %s342_s1 = inlined_call_operand.vmem [shape: f32[4,4], index: 1, kind: input, shape index: {}]   ;;  %s343_s0 = inlined_call_operand.vmem [shape: f32[2,2,4], index: 0, kind: input, shape index: {}]   ;;  %s344_s2 = inlined_call_operand.vmem [shape: f32[1,4], index: 2, kind: input, shape index: {}]   ;;  %s345_s5 = inlined_call_operand.vmem [shape: f32[4,4], index: 5, kind: input, shape index: {}]   ;;  %s346_s3 = inlined_call_operand.vmem [shape: f32[1,4], index: 3, kind: input, shape index: {}]   ;;  %s347_s4 = inlined_call_operand.vmem [shape: f32[1,4], index: 4, kind: input, shape index: {}]   ;;  %s348_s6 = inlined_call_operand.vmem [shape: f32[1,4], index: 6, kind: input, shape index: {}]   ;;  %s349_s7 = inlined_call_operand.vmem [shape: f32[2,4], index: 7, kind: output, shape index: {}]  }
   0x1   :  { %250 = vmatprep.subr.mxu0 %v264_v0  ;;  %v32_v1 = vld [vmem:[%s342_s1] sm:$0xf]  ;;  %252 = vmatprep.mubr.msk.f32.mxu0 %vm265_vm2, %v264_v0  ;;  %vm44_vm3 = vcmask 31744  }
   0x2   :  { %v26_v2 = vld [vmem:[%s343_s0] sm:$0x3]  ;;  %v27_v3 = vld [vmem:[%s343_s0 + $0x2] sm:$0x3]  ;;  %251 = vmatpush3.msk.msra.mxu0 %vm48_vm0, %v32_v1  ;;  %255 = vmatprep.subr.mxu1 %v264_v0 }
   0x3   :  { %v29_v4 = vsel %vm28_vm1, %v26_v2, 0.0  ;;  %v30_v5 = vsel %vm28_vm1, %v27_v3, 0.0  ;;  %257 = vmatprep.mubr.msk.f32.mxu1 %vm265_vm2, %v264_v0  ;;  %v238_v7 = vld [vmem:[%s344_s2] ss:$0 sm:$0xff] }
   0x4   :  { %v31_v6 = vadd.f32 %v30_v5, %v29_v4  ;;  %v36_v17 = vld [vmem:[%s345_s5] sm:$0xf] }
   0x5   :  { %256 = vmatpush3.msk.msra.mxu1 %vm48_vm0, %v36_v17  ;;  %v241_v22 = vld [vmem:[%s346_s3] ss:$0 sm:$0xff] }
   0x6   :  { %253 = vmatmul.mubr.msk.f32.vlgmr.msra.gmra.mxu0 %vm44_vm3, %v31_v6  ;;  %v242_v24 = vld [vmem:[%s347_s4] ss:$0 sm:$0xff] }
   0x7   :  { %v243_v28 = vld [vmem:[%s348_s6] ss:$0 sm:$0xff] }
  0xc6   :  { %v118_v8 = vpop.f32.mrf.mxu0 }
  0xc7   :  { %v119_v9 = vadd.f32 %v238_v7, %v118_v8 }
  0xc8   :  { %v254_v10 = vpop.f32.mrf.mxu0 }
  0xc9   :  { %v122_v11 = vsel %vm28_vm1, %v119_v9, 0.0 }
  0xca   :  { %123 = vadd.xlane.f32.xlu0 %v122_v11 }
 0x153   :  { %v124_v12 = vpop.xlane.xlu0 %123 }
 0x154   :  { %v126_v13 = vmul.f32 0.25, %v124_v12 }
 0x156   :  { %v127_v14 = vsub.f32 %v119_v9, %v126_v13 }
 0x158   :  { %v128_v15 = vmul.f32 %v127_v14, %v127_v14 }
 0x15a   :  { %v129_v16 = vsel %vm28_vm1, %v128_v15, 0.0 }
 0x15b   :  { %130 = vadd.xlane.f32.xlu0 %v129_v16 }
 0x1e4   :  { %v131_v18 = vpop.xlane.xlu0 %130 }
 0x1e5   :  { %v132_v19 = vmul.f32 0.25, %v131_v18 }
 0x1e7   :  { %v133_v20 = vadd.f32 1e-05, %v132_v19 }
 0x1e9   :  { %262 = vrsqrt.f32 %v133_v20 }
 0x1f6   :  { %v263_v21 = vpop.eup %262 }
 0x1f7   :  { %v135_v23 = vmul.f32 %v263_v21, %v127_v14 }
 0x1f9   :  { %v142_v25 = vmul.f32 %v241_v22, %v135_v23 }
 0x1fb   :  { %v149_v26 = vadd.f32 %v242_v24, %v142_v25 }
 0x1fd   :  { %v150_v27 = vmax.f32 %v149_v26, 0.0 }
 0x1ff   :  { %258 = vmatmul.mubr.msk.f32.vlgmr.msra.gmra.mxu1 %vm44_vm3, %v150_v27 }
 0x2bf   :  { %v229_v29 = vpop.f32.mrf.mxu1 }
 0x2c0   :  { %v230_v30 = vadd.f32 %v243_v28, %v229_v29 }
 0x2c1   :  { %v259_v31 = vpop.f32.mrf.mxu1 }
 0x2c2   :  { %233 = vst.msk [vmem:[%s349_s7] sm:$0x3] %vm28_vm1, %v230_v30 }

</bundles_post_ra>
